<compile_context>
chip_gen: v7x
topology: tpu7x:2x2x1
jax: 0.10.0
libtpu: 0.0.40
codegen_flags: <defaults>
</compile_context>

<pallas_src>
import functools
import math

import jax
import jax.numpy as jnp
from jax.experimental import pallas as pl
from jax.experimental.pallas import tpu as pltpu

_INV_SQRT2 = 1.0 / math.sqrt(2.0)
_SQRT_2_OVER_PI = math.sqrt(2.0 / math.pi)


def _gelu_erf(x):
    # exact (erf-based) GELU, matching torch.nn.GELU() default
    return 0.5 * x * (1.0 + jax.lax.erf(x * _INV_SQRT2))


def _gelu_tanh(x):
    # tanh-approx GELU (EUP tanh); ~1e-3 off torch's exact erf form
    return 0.5 * x * (1.0 + jnp.tanh(_SQRT_2_OVER_PI * (x + 0.044715 * x * x * x)))


def _r128(n):
    return 128 * ((n + 127) // 128)


def _offsets(H, Hh, E):
    """Static column offsets inside the packed bias slab / packed output."""
    pack_w = _r128(5 + E)            # lane-dense packed output width
    w_in_w = 2 * H + Hh              # width of fused first-layer weight
    off_bin = 0
    off_b2 = _r128(off_bin + w_in_w)
    off_bs1 = _r128(off_b2 + H)
    off_bfin = _r128(off_bs1 + H)
    return dict(pack_w=pack_w, w_in_w=w_in_w, off_bin=off_bin, off_b2=off_b2,
                off_bs1=off_bs1, off_bfin=off_bfin, bias_w=off_bfin + pack_w)


# ---------------------------------------------------------------------------
# one-time probe: are single-buffered (Buffered(1)) grid-invariant blocks
# supported?  Decided once per process, outside the hot path.
# ---------------------------------------------------------------------------
def _probe_kernel(w_ref, o_ref):
    o_ref[...] = w_ref[...] + 1.0


_SINGLE_BUFFER_OK = None


def _single_buffer_weights_supported():
    global _SINGLE_BUFFER_OK
    if _SINGLE_BUFFER_OK is None:
        try:
            fn = pl.pallas_call(
                _probe_kernel,
                grid=(2,),
                in_specs=[pl.BlockSpec((8, 128), lambda i: (0, 0),
                                       pipeline_mode=pl.Buffered(1))],
                out_specs=pl.BlockSpec((8, 128), lambda i: (0, 0)),
                out_shape=jax.ShapeDtypeStruct((8, 128), jnp.float32),
            )
            jax.block_until_ready(fn(jnp.zeros((8, 128), jnp.float32)))
            _SINGLE_BUFFER_OK = True
        except Exception:            # probe only; the real kernel never goes here
            _SINGLE_BUFFER_OK = False
    return _SINGLE_BUFFER_OK


# ---------------------------------------------------------------------------
# kernel
# ---------------------------------------------------------------------------
def _make_kernel(H, Hh, pack_w, offs, has_mem, approx_gelu):
    w_in_w = 2 * H + Hh
    gelu = _gelu_tanh if approx_gelu else _gelu_erf
    off_bin = offs["off_bin"]
    off_b2 = offs["off_b2"]
    off_bs1 = offs["off_bs1"]
    off_bfin = offs["off_bfin"]
    f32 = jnp.float32

    def kernel(*refs):
        if has_mem:
            x_ref, mem_ref, wA_ref, wB_ref, b_ref, out_ref = refs
        else:
            x_ref, wA_ref, wB_ref, b_ref, out_ref = refs
            mem_ref = None
        cdt = wA_ref.dtype           # MXU operand dtype (bf16)

        x = x_ref[...].astype(cdt)

        # fused first layer: [encoder.0 | outcome.0 | confidence.0] share LHS x
        z = (jnp.dot(x, wA_ref[:, H:H + w_in_w], preferred_element_type=f32)
             + b_ref[:, off_bin:off_bin + w_in_w])
        h1 = jnp.maximum(z[:, :H], 0.0)                 # ReLU (Dropout == id, eval)
        o1 = gelu(z[:, H:2 * H])                        # outcome branch hidden
        c1 = gelu(z[:, 2 * H:2 * H + Hh])               # confidence branch hidden

        # encoder second layer -> emotional features
        feat = (jnp.dot(h1.astype(cdt), wA_ref[:, 0:H], preferred_element_type=f32)
                + b_ref[:, off_b2:off_b2 + H])
        feat_c = feat.astype(cdt)

        # stress_predictor.0 on cat([features, memory_context], -1):
        #   one K=2H matmul when mem is present (fills 256-deep MXU),
        #   K=H (zeros half dropped) when memory_context is None.
        if has_mem:
            lhs_s = jnp.concatenate([feat_c, mem_ref[...].astype(cdt)], axis=-1)
            ws1 = wB_ref[0:2 * H, 0:H]
        else:
            lhs_s = feat_c
            ws1 = wB_ref[0:H, 0:H]
        s1 = jnp.maximum(
            jnp.dot(lhs_s, ws1, preferred_element_type=f32)
            + b_ref[:, off_bs1:off_bs1 + H], 0.0)

        # block-diagonal, lane-placed head matmul:
        #   rows  [feat | s1 | o1 | c1]  x  cols [vad(0:3) | stress(3) | conf(4)
        #                                          | outcome(5:5+E) | 0-pad]
        lhs_f = jnp.concatenate(
            [feat_c, s1.astype(cdt), o1.astype(cdt), c1.astype(cdt)], axis=-1)
        raw = (jnp.dot(lhs_f, wB_ref[:, H:H + pack_w], preferred_element_type=f32)
               + b_ref[:, off_bfin:off_bfin + pack_w])

        # sigmoid on lanes 0..4 (vad / stress / confidence); outcome lanes linear.
        lane = jax.lax.broadcasted_iota(jnp.int32, raw.shape, 1)
        sig = pl.reciprocal(1.0 + jnp.exp(-raw), approx=True)
        out_ref[...] = jnp.where(lane < 5, sig, raw)

    return kernel


@functools.partial(
    jax.jit,
    static_argnames=("H", "Hh", "E", "tile_b", "single_buffer", "approx_gelu"))
def _forward_impl(x, mem, wA, wB, b_all, *, H, Hh, E, tile_b, single_buffer,
                  approx_gelu):
    B = x.shape[0]
    offs = _offsets(H, Hh, E)
    pack_w = offs["pack_w"]
    n_steps = pl.cdiv(B, tile_b)
    has_mem = mem is not None

    kernel = _make_kernel(H, Hh, pack_w, offs, has_mem, approx_gelu)

    def act_spec(cols):
        return pl.BlockSpec((tile_b, cols), lambda i: (i, 0))

    def weight_spec(arr):
        shape = arr.shape
        idx = lambda i: (0,) * len(shape)               # grid-invariant block
        if single_buffer:
            return pl.BlockSpec(shape, idx, pipeline_mode=pl.Buffered(1))
        return pl.BlockSpec(shape, idx)

    act_args = (x,) + ((mem,) if has_mem else ())
    weights = (wA, wB, b_all)
    in_specs = [act_spec(H)] * len(act_args) + [weight_spec(w) for w in weights]

    packed = pl.pallas_call(
        kernel,
        grid=(n_steps,),
        in_specs=in_specs,
        out_specs=act_spec(pack_w),
        out_shape=jax.ShapeDtypeStruct((B, pack_w), jnp.float32),
        compiler_params=pltpu.CompilerParams(
            dimension_semantics=("parallel",)),
    )(*act_args, *weights)

    return {
        "valence": packed[:, 0:1],
        "arousal": packed[:, 1:2],
        "dominance": packed[:, 2:3],
        "stress_level": packed[:, 3:4],
        "confidence": packed[:, 4:5],
        "predicted_outcome": packed[:, 5:5 + E],
    }


def emotional_predictor_forward(x, params, memory_context=None, *,
                                num_emotions=3, tile_b=None, approx_gelu=True):
    """Fused EmotionalPredictor forward. `params` comes from pack_params()."""
    B, H = x.shape
    wA, wB, b_all = params["wA"], params["wB"], params["b_all"]
    Hh = wA.shape[1] - 3 * H
    pack_w = wB.shape[1] - H
    E = num_emotions
    assert 5 + E <= pack_w, "num_emotions inconsistent with packed params"

    if tile_b is None:
        if B <= 8:
            tile_b = B
        elif B <= 1024:
            # >= 2 "parallel" steps so v7x's second TensorCore is used
            tile_b = 8 * (((B + 1) // 2 + 7) // 8)
        else:
            tile_b = 512

    single_buffer = _single_buffer_weights_supported()
    return _forward_impl(x, memory_context, wA, wB, b_all,
                         H=H, Hh=Hh, E=E, tile_b=tile_b,
                         single_buffer=single_buffer, approx_gelu=approx_gelu)


# ---------------------------------------------------------------------------
# parameter construction / packing
# ---------------------------------------------------------------------------
def init_raw_params(key, hidden_size, num_emotions):
    """nn.Linear-style init (U(-1/sqrt(fan_in), +)). Unpacked, f32."""
    H, E = hidden_size, num_emotions
    Hh = H // 2

    def linear(key, fan_in, fan_out):
        kw, kb = jax.random.split(key)
        bound = 1.0 / math.sqrt(fan_in)
        w = jax.random.uniform(kw, (fan_in, fan_out), jnp.float32, -bound, bound)
        b = jax.random.uniform(kb, (1, fan_out), jnp.float32, -bound, bound)
        return w, b

    keys = jax.random.split(key, 11)
    raw = {}
    raw["w1"], raw["b1"] = linear(keys[0], H, H)        # emotional_encoder.0
    raw["w2"], raw["b2"] = linear(keys[1], H, H)        # emotional_encoder.3
    raw["wv"], raw["bv"] = linear(keys[2], H, 1)        # valence_head
    raw["wa"], raw["ba"] = linear(keys[3], H, 1)        # arousal_head
    raw["wd"], raw["bd"] = linear(keys[4], H, 1)        # dominance_head
    raw["ws1"], raw["bs1"] = linear(keys[5], 2 * H, H)  # stress_predictor.0
    raw["ws2"], raw["bs2"] = linear(keys[6], H, 1)      # stress_predictor.3
    raw["wo1"], raw["bo1"] = linear(keys[7], H, H)      # outcome_predictor.0
    raw["wo2"], raw["bo2"] = linear(keys[8], H, E)      # outcome_predictor.2
    raw["wc1"], raw["bc1"] = linear(keys[9], H, Hh)     # confidence_predictor.0
    raw["wc2"], raw["bc2"] = linear(keys[10], Hh, 1)    # confidence_predictor.2
    return raw


def pack_params(raw, dtype=jnp.bfloat16):
    """Pack unpacked weights into the kernel's 2 bf16 slabs + 1 f32 bias slab."""
    H = raw["w1"].shape[0]
    Hh = raw["wc1"].shape[1]
    E = raw["wo2"].shape[1]
    offs = _offsets(H, Hh, E)
    pack_w = offs["pack_w"]

    # wA: [ encoder.3 (H) | encoder.0 (H) | outcome.0 (H) | confidence.0 (Hh) ]
    w_in = jnp.concatenate([raw["w1"], raw["wo1"], raw["wc1"]], axis=1)
    wA = jnp.concatenate([raw["w2"], w_in], axis=1).astype(dtype)

    # wB: col block 0 = stress_predictor.0 weight (2H rows, zero-padded below),
    #     col block 1 = block-diagonal lane-placed head weight (3H+Hh rows).
    Kfin = 3 * H + Hh
    w_fin = jnp.zeros((Kfin, pack_w), jnp.float32)
    whead = jnp.concatenate([raw["wv"], raw["wa"], raw["wd"]], axis=1)
    w_fin = w_fin.at[0:H, 0:3].set(whead)                   # feat rows -> vad
    w_fin = w_fin.at[H:2 * H, 3:4].set(raw["ws2"])          # s1 rows   -> stress
    w_fin = w_fin.at[2 * H:3 * H, 5:5 + E].set(raw["wo2"])  # o1 rows   -> outcome
    w_fin = w_fin.at[3 * H:3 * H + Hh, 4:5].set(raw["wc2"]) # c1 rows   -> confidence
    wB = jnp.zeros((Kfin, H + pack_w), jnp.float32)
    wB = wB.at[0:2 * H, 0:H].set(raw["ws1"])
    wB = wB.at[:, H:].set(w_fin)
    wB = wB.astype(dtype)

    # bias slab (f32), 128-aligned segments
    b_all = jnp.zeros((1, offs["bias_w"]), jnp.float32)
    b_in = jnp.concatenate([raw["b1"], raw["bo1"], raw["bc1"]], axis=1)
    b_all = b_all.at[:, offs["off_bin"]:offs["off_bin"] + offs["w_in_w"]].set(b_in)
    b_all = b_all.at[:, offs["off_b2"]:offs["off_b2"] + H].set(raw["b2"])
    b_all = b_all.at[:, offs["off_bs1"]:offs["off_bs1"] + H].set(raw["bs1"])
    b_fin = jnp.zeros((1, pack_w), jnp.float32)
    b_fin = b_fin.at[:, 0:3].set(
        jnp.concatenate([raw["bv"], raw["ba"], raw["bd"]], axis=1))
    b_fin = b_fin.at[:, 3:4].set(raw["bs2"])
    b_fin = b_fin.at[:, 4:5].set(raw["bc2"])
    b_fin = b_fin.at[:, 5:5 + E].set(raw["bo2"])
    b_all = b_all.at[:, offs["off_bfin"]:offs["off_bfin"] + pack_w].set(b_fin)

    return {"wA": wA, "wB": wB, "b_all": b_all}


# ---------------------------------------------------------------------------
# reference + metrics (host-side bookkeeping of the module)
# ---------------------------------------------------------------------------
def _reference_forward(x, raw, memory_context=None, *, dtype=jnp.bfloat16,
                       approx_gelu=True):
    """Pure-jnp forward from UNPACKED weights (validates kernel + packing)."""
    f32 = jnp.float32
    gelu = _gelu_tanh if approx_gelu else _gelu_erf

    def mm(a, w, b):
        return jnp.dot(a.astype(dtype), w.astype(dtype),
                       preferred_element_type=f32) + b

    h1 = jnp.maximum(mm(x, raw["w1"], raw["b1"]), 0.0)      # Dropout == id (eval)
    feat = mm(h1, raw["w2"], raw["b2"])
    valence = jax.nn.sigmoid(mm(feat, raw["wv"], raw["bv"]))
    arousal = jax.nn.sigmoid(mm(feat, raw["wa"], raw["ba"]))
    dominance = jax.nn.sigmoid(mm(feat, raw["wd"], raw["bd"]))
    mem = memory_context if memory_context is not None else jnp.zeros_like(feat)
    stress_in = jnp.concatenate([feat, mem], axis=-1)
    s1 = jnp.maximum(mm(stress_in, raw["ws1"], raw["bs1"]), 0.0)
    stress = jax.nn.sigmoid(mm(s1, raw["ws2"], raw["bs2"]))
    o1 = gelu(mm(x, raw["wo1"], raw["bo1"]))
    outcome = mm(o1, raw["wo2"], raw["bo2"])
    c1 = gelu(mm(x, raw["wc1"], raw["bc1"]))
    conf = jax.nn.sigmoid(mm(c1, raw["wc2"], raw["bc2"]))
    return {"valence": valence, "arousal": arousal, "dominance": dominance,
            "stress_level": stress, "predicted_outcome": outcome,
            "confidence": conf}


def _metrics_from_predictions(preds):
    """Replicates _update_state / get_metrics on the first forward call."""
    valence = float(preds["valence"].mean())
    arousal = float(preds["arousal"].mean())
    dominance = float(preds["dominance"].mean())
    stress = float(preds["stress_level"].mean())
    confidence = float(preds["confidence"].mean())
    stability = 1.0                       # len(history) < 2 on first call
    attention_focus = ((arousal + stress) / 2.0) * (1.0 + stability)
    return {
        "valence": valence, "arousal": arousal, "dominance": dominance,
        "stress_level": stress, "attention_focus": attention_focus,
        "emotional_stability": stability, "confidence": confidence,
        "stability": 0.0, "adaptation_rate": 0.0, "meta_memory_influence": 0.0,
    }


if __name__ == "__main__":
    B, H, E = 32, 128, 3                   # small shapes; 2 grid steps at tile_b=16
    key = jax.random.PRNGKey(0)
    k_param, k_x, k_mem = jax.random.split(key, 3)

    raw = init_raw_params(k_param, H, E)
    params = pack_params(raw)
    x = jax.random.normal(k_x, (B, H), jnp.float32)          # input_state
    mem = jax.random.normal(k_mem, (B, H), jnp.float32)      # memory_context

    # Path 1: memory_context=None (mem half of stress weight dropped)
    preds_none = emotional_predictor_forward(x, params, None, num_emotions=E)
    # Path 2: explicit memory_context (fused K=2H stress matmul)
    preds_mem = emotional_predictor_forward(x, params, mem, num_emotions=E)
    jax.block_until_ready((preds_none, preds_mem))

    for preds, mc in ((preds_none, None), (preds_mem, mem)):
        ref = _reference_forward(x, raw, mc)
        for name in ref:
            assert preds[name].shape == ref[name].shape, name
            err = float(jnp.max(jnp.abs(preds[name] - ref[name])))
            assert err < 1e-2, (name, err)

    metrics = _metrics_from_predictions(preds_none)
    assert preds_none["valence"].shape == (B, 1)
    assert preds_none["stress_level"].shape == (B, 1)
    assert preds_none["predicted_outcome"].shape == (B, E)
    assert preds_none["confidence"].shape == (B, 1)
    assert all(isinstance(v, float) for v in metrics.values())

    print("KERNEL_OK")
</pallas_src>

<mosaic_0001>
module attributes {stable_mosaic.version = 11 : i64} {
  func.func @_probe_kernel(%arg0: i32, %arg1: memref<8x128xf32, #tpu.memory_space<vmem>>, %arg2: memref<8x128xf32, #tpu.memory_space<vmem>>) attributes {dimension_semantics = [#tpu.dimension_semantics<arbitrary>], iteration_bounds = array<i64: 2>, scalar_prefetch = 0 : i64, scratch_operands = 0 : i64, tpu.core_type = #tpu.core_type<tc>, window_params = [{pipeline_mode = #tpu.pipeline_mode<synchronous>, transform_indices = @transform_0, window_bounds = array<i64: 8, 128>}, {pipeline_mode = #tpu.pipeline_mode<synchronous>, transform_indices = @transform_1, window_bounds = array<i64: 8, 128>}]} {
    %c0 = arith.constant 0 : index
    %c0_0 = arith.constant 0 : index
    %0 = vector.load %arg1[%c0, %c0_0] : memref<8x128xf32, #tpu.memory_space<vmem>>, vector<8x128xf32>
    %cst = arith.constant 1.000000e+00 : f32
    %1 = vector.broadcast %cst : f32 to vector<8x128xf32>
    %2 = arith.addf %0, %1 : vector<8x128xf32>
    %c0_1 = arith.constant 0 : index
    %c0_2 = arith.constant 0 : index
    %3 = vector.load %arg2[%c0_1, %c0_2] : memref<8x128xf32, #tpu.memory_space<vmem>>, vector<8x128xf32>
    tpu.vector_store %arg2[%c0_1, %c0_2], %2 {strides = array<i32>} : memref<8x128xf32, #tpu.memory_space<vmem>>, vector<8x128xf32>,
    return
  }
  func.func @transform_0(%arg0: i32) -> (i32, i32) {
    %c0_i32 = arith.constant 0 : i32
    %c0_i32_0 = arith.constant 0 : i32
    %c0_i32_1 = arith.constant 0 : i32
    return %c0_i32, %c0_i32_0 : i32, i32
  }
  func.func @transform_1(%arg0: i32) -> (i32, i32) {
    %c0_i32 = arith.constant 0 : i32
    %c0_i32_0 = arith.constant 0 : i32
    %c0_i32_1 = arith.constant 0 : i32
    return %c0_i32, %c0_i32_0 : i32, i32
  }
}

module attributes {stable_mosaic.version = 11 : i64} {
  func.func @kernel(%arg0: i32, %arg1: memref<16x128xf32, #tpu.memory_space<vmem>>, %arg2: memref<128x448xbf16, #tpu.memory_space<vmem>>, %arg3: memref<448x256xbf16, #tpu.memory_space<vmem>>, %arg4: memref<1x768xf32, #tpu.memory_space<vmem>>, %arg5: memref<16x128xf32, #tpu.memory_space<vmem>>) attributes {dimension_semantics = [#tpu.dimension_semantics<parallel>], iteration_bounds = array<i64: 2>, scalar_prefetch = 0 : i64, scratch_operands = 0 : i64, tpu.core_type = #tpu.core_type<tc>, window_params = [{transform_indices = @transform_0, window_bounds = array<i64: 16, 128>}, {pipeline_mode = #tpu.pipeline_mode<synchronous>, transform_indices = @transform_1, window_bounds = array<i64: 128, 448>}, {pipeline_mode = #tpu.pipeline_mode<synchronous>, transform_indices = @transform_2, window_bounds = array<i64: 448, 256>}, {pipeline_mode = #tpu.pipeline_mode<synchronous>, transform_indices = @transform_3, window_bounds = array<i64: 1, 768>}, {transform_indices = @transform_4, window_bounds = array<i64: 16, 128>}]} {
    %c0 = arith.constant 0 : index
    %c0_0 = arith.constant 0 : index
    %0 = vector.load %arg1[%c0, %c0_0] : memref<16x128xf32, #tpu.memory_space<vmem>>, vector<16x128xf32>
    %1 = arith.truncf %0 : vector<16x128xf32> to vector<16x128xbf16>
    %c0_1 = arith.constant 0 : index
    %c128 = arith.constant 128 : index
    %2 = vector.load %arg2[%c0_1, %c128] : memref<128x448xbf16, #tpu.memory_space<vmem>>, vector<128x320xbf16>
    %cst = arith.constant dense<0.000000e+00> : vector<16x320xf32>
    %3 = tpu.matmul %1, %2, %cst {dimension_numbers = #tpu.dot_dimension_numbers<[1], [0], [0], [1], [0, 0, 1, 1], [], []>} : vector<16x128xbf16>, vector<128x320xbf16>, vector<16x320xf32> -> vector<16x320xf32>
    %c0_2 = arith.constant 0 : index
    %c0_3 = arith.constant 0 : index
    %4 = vector.load %arg4[%c0_2, %c0_3] : memref<1x768xf32, #tpu.memory_space<vmem>>, vector<1x320xf32>
    %5 = vector.broadcast %4 : vector<1x320xf32> to vector<16x320xf32>
    %6 = arith.addf %3, %5 : vector<16x320xf32>
    %7 = vector.extract_strided_slice %6 {offsets = [0, 0], sizes = [16, 128], strides = [1, 1]} : vector<16x320xf32> to vector<16x128xf32>
    %cst_4 = arith.constant 0.000000e+00 : f32
    %8 = vector.broadcast %cst_4 : f32 to vector<16x128xf32>
    %9 = arith.maximumf %7, %8 : vector<16x128xf32>
    %10 = vector.extract_strided_slice %6 {offsets = [0, 128], sizes = [16, 128], strides = [1, 1]} : vector<16x320xf32> to vector<16x128xf32>
    %cst_5 = arith.constant 5.000000e-01 : f32
    %11 = vector.broadcast %cst_5 : f32 to vector<16x128xf32>
    %12 = arith.mulf %11, %10 : vector<16x128xf32>
    %cst_6 = arith.constant 4.471500e-02 : f32
    %13 = vector.broadcast %cst_6 : f32 to vector<16x128xf32>
    %14 = arith.mulf %13, %10 : vector<16x128xf32>
    %15 = arith.mulf %14, %10 : vector<16x128xf32>
    %16 = arith.mulf %15, %10 : vector<16x128xf32>
    %17 = arith.addf %10, %16 : vector<16x128xf32>
    %cst_7 = arith.constant 0.797884583 : f32
    %18 = vector.broadcast %cst_7 : f32 to vector<16x128xf32>
    %19 = arith.mulf %18, %17 : vector<16x128xf32>
    %20 = math.tanh %19 : vector<16x128xf32>
    %cst_8 = arith.constant 1.000000e+00 : f32
    %21 = vector.broadcast %cst_8 : f32 to vector<16x128xf32>
    %22 = arith.addf %21, %20 : vector<16x128xf32>
    %23 = arith.mulf %12, %22 : vector<16x128xf32>
    %24 = vector.extract_strided_slice %6 {offsets = [0, 256], sizes = [16, 64], strides = [1, 1]} : vector<16x320xf32> to vector<16x64xf32>
    %cst_9 = arith.constant 5.000000e-01 : f32
    %25 = vector.broadcast %cst_9 : f32 to vector<16x64xf32>
    %26 = arith.mulf %25, %24 : vector<16x64xf32>
    %cst_10 = arith.constant 4.471500e-02 : f32
    %27 = vector.broadcast %cst_10 : f32 to vector<16x64xf32>
    %28 = arith.mulf %27, %24 : vector<16x64xf32>
    %29 = arith.mulf %28, %24 : vector<16x64xf32>
    %30 = arith.mulf %29, %24 : vector<16x64xf32>
    %31 = arith.addf %24, %30 : vector<16x64xf32>
    %cst_11 = arith.constant 0.797884583 : f32
    %32 = vector.broadcast %cst_11 : f32 to vector<16x64xf32>
    %33 = arith.mulf %32, %31 : vector<16x64xf32>
    %34 = math.tanh %33 : vector<16x64xf32>
    %cst_12 = arith.constant 1.000000e+00 : f32
    %35 = vector.broadcast %cst_12 : f32 to vector<16x64xf32>
    %36 = arith.addf %35, %34 : vector<16x64xf32>
    %37 = arith.mulf %26, %36 : vector<16x64xf32>
    %38 = arith.truncf %9 : vector<16x128xf32> to vector<16x128xbf16>
    %c0_13 = arith.constant 0 : index
    %c0_14 = arith.constant 0 : index
    %39 = vector.load %arg2[%c0_13, %c0_14] : memref<128x448xbf16, #tpu.memory_space<vmem>>, vector<128x128xbf16>
    %cst_15 = arith.constant dense<0.000000e+00> : vector<16x128xf32>
    %40 = tpu.matmul %38, %39, %cst_15 {dimension_numbers = #tpu.dot_dimension_numbers<[1], [0], [0], [1], [0, 0, 1, 1], [], []>} : vector<16x128xbf16>, vector<128x128xbf16>, vector<16x128xf32> -> vector<16x128xf32>
    %c0_16 = arith.constant 0 : index
    %c384 = arith.constant 384 : index
    %41 = vector.load %arg4[%c0_16, %c384] : memref<1x768xf32, #tpu.memory_space<vmem>>, vector<1x128xf32>
    %42 = vector.broadcast %41 : vector<1x128xf32> to vector<16x128xf32>
    %43 = arith.addf %40, %42 : vector<16x128xf32>
    %44 = arith.truncf %43 : vector<16x128xf32> to vector<16x128xbf16>
    %c0_17 = arith.constant 0 : index
    %c0_18 = arith.constant 0 : index
    %45 = vector.load %arg3[%c0_17, %c0_18] : memref<448x256xbf16, #tpu.memory_space<vmem>>, vector<128x128xbf16>
    %cst_19 = arith.constant dense<0.000000e+00> : vector<16x128xf32>
    %46 = tpu.matmul %44, %45, %cst_19 {dimension_numbers = #tpu.dot_dimension_numbers<[1], [0], [0], [1], [0, 0, 1, 1], [], []>} : vector<16x128xbf16>, vector<128x128xbf16>, vector<16x128xf32> -> vector<16x128xf32>
    %c0_20 = arith.constant 0 : index
    %c512 = arith.constant 512 : index
    %47 = vector.load %arg4[%c0_20, %c512] : memref<1x768xf32, #tpu.memory_space<vmem>>, vector<1x128xf32>
    %48 = vector.broadcast %47 : vector<1x128xf32> to vector<16x128xf32>
    %49 = arith.addf %46, %48 : vector<16x128xf32>
    %cst_21 = arith.constant 0.000000e+00 : f32
    %50 = vector.broadcast %cst_21 : f32 to vector<16x128xf32>
    %51 = arith.maximumf %49, %50 : vector<16x128xf32>
    %52 = arith.truncf %51 : vector<16x128xf32> to vector<16x128xbf16>
    %53 = arith.truncf %23 : vector<16x128xf32> to vector<16x128xbf16>
    %54 = arith.truncf %37 : vector<16x64xf32> to vector<16x64xbf16>
    %55 = tpu.concatenate %44, %52, %53, %54 in 1 : vector<16x128xbf16>, vector<16x128xbf16>, vector<16x128xbf16>, vector<16x64xbf16> -> vector<16x448xbf16>
    %c0_22 = arith.constant 0 : index
    %c128_23 = arith.constant 128 : index
    %56 = vector.load %arg3[%c0_22, %c128_23] : memref<448x256xbf16, #tpu.memory_space<vmem>>, vector<448x128xbf16>
    %cst_24 = arith.constant dense<0.000000e+00> : vector<16x128xf32>
    %57 = tpu.matmul %55, %56, %cst_24 {dimension_numbers = #tpu.dot_dimension_numbers<[1], [0], [0], [1], [0, 0, 1, 1], [], []>} : vector<16x448xbf16>, vector<448x128xbf16>, vector<16x128xf32> -> vector<16x128xf32>
    %c0_25 = arith.constant 0 : index
    %c640 = arith.constant 640 : index
    %58 = vector.load %arg4[%c0_25, %c640] : memref<1x768xf32, #tpu.memory_space<vmem>>, vector<1x128xf32>
    %59 = vector.broadcast %58 : vector<1x128xf32> to vector<16x128xf32>
    %60 = arith.addf %57, %59 : vector<16x128xf32>
    %61 = tpu.iota {dimensions = array<i32: 1>} : vector<16x128xi32>
    %cst_26 = arith.constant 0.000000e+00 : f32
    %62 = vector.broadcast %cst_26 : f32 to vector<16x128xf32>
    %63 = arith.subf %62, %60 : vector<16x128xf32>
    %64 = math.exp %63 : vector<16x128xf32>
    %cst_27 = arith.constant 1.000000e+00 : f32
    %65 = vector.broadcast %cst_27 : f32 to vector<16x128xf32>
    %66 = arith.addf %65, %64 : vector<16x128xf32>
    %67 = tpu.reciprocal %66 {approx = true} : vector<16x128xf32> -> vector<16x128xf32>
    %c5_i32 = arith.constant 5 : i32
    %68 = vector.broadcast %c5_i32 : i32 to vector<16x128xi32>
    %69 = arith.cmpi slt, %61, %68 : vector<16x128xi32>
    %70 = arith.select %69, %67, %60 : vector<16x128xi1>, vector<16x128xf32>
    %c0_28 = arith.constant 0 : index
    %c0_29 = arith.constant 0 : index
    %71 = vector.load %arg5[%c0_28, %c0_29] : memref<16x128xf32, #tpu.memory_space<vmem>>, vector<16x128xf32>
    tpu.vector_store %arg5[%c0_28, %c0_29], %70 {strides = array<i32>} : memref<16x128xf32, #tpu.memory_space<vmem>>, vector<16x128xf32>,
    return
  }
  func.func @transform_0(%arg0: i32) -> (i32, i32) {
    %c0_i32 = arith.constant 0 : i32
    %c0_i32_0 = arith.constant 0 : i32
    return %arg0, %c0_i32 : i32, i32
  }
  func.func @transform_1(%arg0: i32) -> (i32, i32) {
    %c0_i32 = arith.constant 0 : i32
    %c0_i32_0 = arith.constant 0 : i32
    %c0_i32_1 = arith.constant 0 : i32
    return %c0_i32, %c0_i32_0 : i32, i32
  }
  func.func @transform_2(%arg0: i32) -> (i32, i32) {
    %c0_i32 = arith.constant 0 : i32
    %c0_i32_0 = arith.constant 0 : i32
    %c0_i32_1 = arith.constant 0 : i32
    return %c0_i32, %c0_i32_0 : i32, i32
  }
  func.func @transform_3(%arg0: i32) -> (i32, i32) {
    %c0_i32 = arith.constant 0 : i32
    %c0_i32_0 = arith.constant 0 : i32
    %c0_i32_1 = arith.constant 0 : i32
    return %c0_i32, %c0_i32_0 : i32, i32
  }
  func.func @transform_4(%arg0: i32) -> (i32, i32) {
    %c0_i32 = arith.constant 0 : i32
    %c0_i32_0 = arith.constant 0 : i32
    return %arg0, %c0_i32 : i32, i32
  }
}

</mosaic_0001>

<bundles_post_ra>
// kernel: tpu_custom_call.1
= control target key start
LH: loop header
LB: loop body
LE: loop exit
PB: predicated region body
PF: predicated region fallthrough
CT: control target
= control target key end

     0   :  { %6 = vsyncpa [#allocation3], 0  ;;  %s341_s0 = inlined_call_operand.hbm [shape: f32[8,128], index: 0, kind: input, shape index: {}]   ;;  %s342_s1 = inlined_call_operand.hbm [shape: f32[8,128], index: 1, kind: output, shape index: {}]  }
   0x1   :  { %7 = vsyncpa [#allocation4], 0  ;;  %s262_s6 = smov 0  }
   0x2 LB: > { %s145_s7 = sadd.s32 4294967295, %s248_s6   ;;  %p146_p0 = scmp.ge.s32.totalorder %s248_s6, 1  ;;  %s248_s6 = sphi %s262_s6, %s13_s6  }
   0x3   : > { %p60_p1 = scmp.lt.s32.totalorder %s248_s6, 3  ;;  %p276_p3 = scmp.eq.s32.totalorder %s145_s7, 0 }
   0x4   : > { %s250_s10 = smov [#allocation2]   ;;  %s180_s15 = scalar_lea.hbm %s341_s0, 128 }
   0x5   : > { %p270_p2 = pnand %p146_p0, %p60_p1  ;;  %s73_s11 = sshll.u32 %s250_s10, 4  ;;  %s74_s11 = int_to_ptr.vmem [resolvable:$true] %s73_s11 }
   0x6   : > { %s347_s9 = scalar_select %p276_p3, 1, 0 }
   0x7   : > { %s346_s8 = scalar_select %p270_p2, 1, 0 }
   0x8   : > { %p162_p4 = pneg %p270_p2  ;;  %p181_p6 = scmp.ne.s32.totalorder %s341_s0, %s180_s15 }
   0x9   : > { %p187_p10 = scmp.lt.u32.totalorder %s180_s15, %s341_s0 }
   0xa   : > { %p284_p5 = pnand %p276_p3, %p162_p4 }
   0xc   : > { %p182_p7 = pneg %p284_p5 }
   0xe   : > { %p183_p8 = pnand %p182_p7, %p181_p6 }
  0x10   : > { %p184_p9 = pneg %p183_p8 }
  0x12   : > { %p189_p11 = pnand %p187_p10, %p184_p9 }
  0x14   : > { %192 = shalt.err (!%p189_p11)
}
  0x15   : > { %s193_s20 = scalar_lea.vmem %s74_s11, 128  ;;  %p201_p1 = scmp.lt.s32.totalorder %s74_s11, %s74_s11 }
  0x16   : > { %p194_p12 = scmp.ne.s32.totalorder %s74_s11, %s193_s20  ;;  %p202_p4 = scmp.lt.s32.totalorder %s193_s20, %s193_s20 }
  0x18   : > { %p196_p13 = pnand %p194_p12, %p182_p7  ;;  %p203_p3 = por %p202_p4, %p201_p1 }
  0x1a   : > { %p197_p0 = pneg %p196_p13 }
  0x1c   : > { %p204_p2 = pnand %p203_p3, %p197_p0 }
  0x1e   : > { %207 = shalt.err (!%p204_p2)
}
  0x1f   : > { %165 = dma.hbm_to_vmem [thread:$0]  (!%p284_p5), %s341_s0, 128, %s74_s11, [#allocation3]  }
  0x20   : > { %p349_p6 = scmp.ne.s32.totalorder %s346_s8, 0 }
  0x21   : > { %p350_p8 = scmp.ne.s32.totalorder (!%p349_p6), %s347_s9, 0 }
  0x22   : > { %86 = sbr.rel (%p349_p6) target bundleno = 67 (0x43), region = 24 }
  0x29   : > { %239 = dma.done.wait (%p350_p8), [#allocation3], 128  }
  0x2a   : > { %241 = vsyncadd (%p350_p8), [#allocation3], 4294967168  ;;  %s251_s23 = smov [#allocation5]   ;;  %v96_v0 = vld [vmem:[#allocation2] sm:$0xff]  ;;  %p312_p2 = scmp.eq.s32.totalorder %s145_s7, 1 }
  0x2b   : > { %s106_s24 = sshll.u32 %s251_s23, 4  ;;  %v97_v1 = vadd.f32 1.0, %v96_v0  ;;  %s107_s24 = int_to_ptr.vmem [resolvable:$true] %s106_s24 }
  0x2c   : > { %s208_s26 = scalar_lea.vmem %s107_s24, 128  ;;  %p215_p9 = scmp.lt.s32.totalorder %s107_s24, %s107_s24 }
  0x2d   : > { %98 = vst [vmem:[#allocation5] sm:$0xff] %v97_v1  ;;  %p209_p3 = scmp.ne.s32.totalorder %s107_s24, %s208_s26  ;;  %p216_p10 = scmp.lt.s32.totalorder %s208_s26, %s208_s26 }
  0x2f   : > { %p210_p5 = pnand %p209_p3, %p312_p2  ;;  %p217_p11 = por %p216_p10, %p215_p9 }
  0x31   : > { %p211_p7 = pneg %p210_p5 }
  0x33   : > { %p218_p12 = pnand %p217_p11, %p211_p7 }
  0x35   : > { %221 = shalt.err (!%p218_p12)
}
  0x36   : > { %s222_s29 = scalar_lea.hbm %s342_s1, 128 }
  0x37   : > { %p223_p13 = scmp.ne.s32.totalorder %s342_s1, %s222_s29  ;;  %p228_p4 = scmp.lt.u32.totalorder %s222_s29, %s342_s1 }
  0x39   : > { %p224_p0 = pnand %p223_p13, %p312_p2 }
  0x3b   : > { %p225_p1 = pneg %p224_p0 }
  0x3d   : > { %p230_p6 = pnand %p228_p4, %p225_p1 }
  0x3f   : > { %233 = shalt.err (!%p230_p6)
}
  0x40   : > { %159 = dma.vmem_to_hbm [thread:$0]  (%p312_p2), %s107_s24, 128, %s342_s1, [#allocation4]  }
  0x41   : > { %243 = dma.done.wait (%p312_p2), [#allocation4], 128  }
  0x42   : > { %245 = vsyncadd (%p312_p2), [#allocation4], 4294967168 }
  0x43 PF: > { %s13_s6 = sadd.s32 1, %s248_s6  }
  0x44   : > { %p10_p8 = scmp.ge.s32.totalorder %s13_s6, 4  }
  0x46   :  { %12 = sbr.rel (!%p10_p8) target bundleno = 2 (0x2), region = 53 }
  0x4d   :  { %119 = vsyncpa [#allocation3], 1 }
  0x4e   :  { %121 = vsyncpa [#allocation3 + $0x1], 1 }
  0x4f   :  { %122 = vsyncpa [#allocation4], 1 }
  0x50   :  { %124 = vsyncpa [#allocation4 + $0x1], 1 }

// kernel: _forward_impl.1
= control target key start
LH: loop header
LB: loop body
LE: loop exit
PB: predicated region body
PF: predicated region fallthrough
CT: control target
= control target key end

     0   :  { %s1456_s15 = smov 0   ;;  %s1750_s0 = inlined_call_operand.vmem [shape: f32[32,128], index: 0, kind: input, shape index: {}]   ;;  %s1751_s1 = inlined_call_operand.vmem [shape: bf16[128,448], index: 1, kind: input, shape index: {}]   ;;  %s1752_s2 = inlined_call_operand.vmem [shape: bf16[448,256], index: 2, kind: input, shape index: {}]   ;;  %s1753_s3 = inlined_call_operand.vmem [shape: f32[1,768], index: 3, kind: input, shape index: {}]   ;;  %s1754_s4 = inlined_call_operand.vmem [shape: f32[32,128], index: 4, kind: output, shape index: {}]  }
   0x1 LB: > { %s1125_s16 = sadd.s32 4294967295, %s1426_s15   ;;  %p1129_p0 = scmp.ge.s32.totalorder %s1426_s15, 1  ;;  %s1426_s15 = sphi %s1456_s15, %s14_s15  }
   0x2   : > { %p163_p1 = scmp.lt.s32.totalorder %s1426_s15, 3 }
   0x4   : > { %p164_p2 = pnand %p1129_p0, %p163_p1 }
   0x5   : > { %v1328_v0 = vld [vmem:[%s1751_s1 + $0x8] ss:$16 sps:$4 sm:$0xff] (!%p164_p2)   ;;  %v1330_v1 = vld [vmem:[%s1751_s1 + $0x4] ss:$16 sps:$4 sm:$0xff] (!%p164_p2)   ;;  %v1428_v2 = vmov (!%p164_p2), 0   ;;  %v1429_v4 = vmov (!%p164_p2), 0.0   ;;  %v239_v44 = vlaneseq (!%p164_p2) }
   0x6   : > { %167 = sbr.rel (%p164_p2) target bundleno = 948 (0x3b4), region = 36  ;;  %414 = vmatprep.mubr.bf16.mxu0 (!%p164_p2), %v1428_v2  ;;  %382 = vmatprep.subr.bf16.mxu0 (!%p164_p2), %v1328_v0  ;;  %v1331_v3 = vld [vmem:[%s1751_s1 + $0x28] ss:$16 sps:$4 sm:$0xff] (!%p164_p2)   ;;  %v1333_v5 = vld [vmem:[%s1751_s1 + $0x24] ss:$16 sps:$4 sm:$0xff] (!%p164_p2)   ;;  %s1130_s25 = sshll.u32 (!%p164_p2), %s1125_s16, 1 }
   0x7   : > { %1257 = vmatprep.subr.bf16.mxu1 (!%p164_p2), %v1429_v4  ;;  %383 = vmatpush1.bf16.msra.mxu0 (!%p164_p2), %v1330_v1  ;;  %v1334_v6 = vld [vmem:[%s1751_s1 + $0x48] ss:$16 sps:$4 sm:$0xff] (!%p164_p2)   ;;  %p190_p3 = scmp.lt.s32.totalorder (!%p164_p2), %s1130_s25, 3  ;;  %v1336_v7 = vld [vmem:[%s1751_s1 + $0x44] ss:$16 sps:$4 sm:$0xff] (!%p164_p2)   ;;  %vm1430_vm0 = vmmov (!%p164_p2), 0  }
   0x8   : > { %384 = vmatprep.subr.bf16.mxu0 (!%p164_p2), %v1331_v3  ;;  %v1337_v8 = vld [vmem:[%s1751_s1 + $0x68] ss:$16 sps:$4 sm:$0xff] (!%p164_p2)   ;;  %v1339_v9 = vld [vmem:[%s1751_s1 + $0x64] ss:$16 sps:$4 sm:$0xff] (!%p164_p2)   ;;  %v1358_v15 = vld [vmem:[%s1751_s1 + $0xc] ss:$16 sps:$4 sm:$0xff] (!%p164_p2)   ;;  %1273 = vmatprep.mubr.msk.bf16.mxu1 (!%p164_p2), %vm1430_vm0, %v1429_v4 }
   0x9   : > { %v1340_v10 = vld [vmem:[%s1751_s1 + $0x88] ss:$16 sps:$4 sm:$0xff] (!%p164_p2)   ;;  %v1342_v11 = vld [vmem:[%s1751_s1 + $0x84] ss:$16 sps:$4 sm:$0xff] (!%p164_p2)   ;;  %1258 = vmatpush3.bf16.msra.mxu1 (!%p164_p2), %v1358_v15  ;;  %v1352_v21 = vld [vmem:[%s1751_s1] ss:$16 sps:$4 sm:$0xff] (!%p164_p2)  }
   0xa   : > { %v1343_v12 = vld [vmem:[%s1751_s1 + $0xa8] ss:$16 sps:$4 sm:$0xff] (!%p164_p2)   ;;  %v1345_v13 = vld [vmem:[%s1751_s1 + $0xa4] ss:$16 sps:$4 sm:$0xff] (!%p164_p2)   ;;  %1259 = vmatprep.subr.bf16.mxu1 (!%p164_p2), %v1429_v4  ;;  %v1353_v23 = vld [vmem:[%s1751_s1 + $0x20] ss:$16 sps:$4 sm:$0xff] (!%p164_p2)  }
   0xb   : > { %385 = vmatpush1.bf16.msra.mxu0 (!%p164_p2), %v1333_v5  ;;  %v1346_v14 = vld [vmem:[%s1751_s1 + $0xc8] ss:$16 sps:$4 sm:$0xff] (!%p164_p2)   ;;  %v1348_v16 = vld [vmem:[%s1751_s1 + $0xc4] ss:$16 sps:$4 sm:$0xff] (!%p164_p2)   ;;  %v1354_v24 = vld [vmem:[%s1751_s1 + $0x40] ss:$16 sps:$4 sm:$0xff] (!%p164_p2)  }
   0xc   : > { %386 = vmatprep.subr.bf16.mxu0 (!%p164_p2), %v1334_v6  ;;  %v1349_v17 = vld [vmem:[%s1751_s1 + $0xe8] ss:$16 sps:$4 sm:$0xff] (!%p164_p2)   ;;  %v1351_v18 = vld [vmem:[%s1751_s1 + $0xe4] ss:$16 sps:$4 sm:$0xff] (!%p164_p2)   ;;  %v1355_v25 = vld [vmem:[%s1751_s1 + $0x60] ss:$16 sps:$4 sm:$0xff] (!%p164_p2)  }
   0xd   : > { %s1756_s25 = smov (!%p190_p3, %s1130_s25), 3  ;;  %v1356_v26 = vld [vmem:[%s1751_s1 + $0x80] ss:$16 sps:$4 sm:$0xff]   ;;  %v1360_v29 = vld [vmem:[%s1751_s1 + $0x2c] ss:$16 sps:$4 sm:$0xff]   ;;  %v240_v45 = vshrl.u32 %v239_v44, 7 }
   0xe   : > { %s1131_s10 = sshll.u32 %s1756_s25, 3  ;;  %v1357_v27 = vld [vmem:[%s1751_s1 + $0xa0] ss:$16 sps:$4 sm:$0xff]   ;;  %1260 = vmatpush3.bf16.msra.mxu1 %v1360_v29  ;;  %v1362_v31 = vld [vmem:[%s1751_s1 + $0x4c] ss:$16 sps:$4 sm:$0xff]   ;;  %vm966_vm1 = vcmask 523264  }
   0xf   : > { %387 = vmatpush1.bf16.msra.mxu0 %v1336_v7  ;;  %s193_s29 = scalar_lea.vmem %s1750_s0, %s1131_s10  ;;  %v1359_v28 = vld [vmem:[%s1751_s1 + $0xc0] ss:$16 sps:$4 sm:$0xff]   ;;  %1261 = vmatprep.subr.bf16.mxu1 %v1429_v4  ;;  %v1363_v32 = vld [vmem:[%s1751_s1 + $0x6c] ss:$16 sps:$4 sm:$0xff]   ;;  %v241_v46 = vsub.s32 0, %v240_v45  ;;  %v245_v48 = vsub.s32 1, %v240_v45 }
  0x10   : > { %388 = vmatprep.subr.bf16.mxu0 %v1337_v8  ;;  %v202_v19 = vld [vmem:[%s193_s29] sm:$0xff]  ;;  %v203_v20 = vld [vmem:[%s193_s29 + $0x8] sm:$0xff]  ;;  %v1369_v38 = vld [vmem:[%s1752_s2 + $0x10] ss:$8 sps:$4 sm:$0xff]   ;;  %s199_s29 = scalar_lea.vmem %s1754_s4, %s1131_s10 }
  0x11   : > { %v204_v22 = vpack.c.bf16 %v203_v20, %v202_v19  ;;  %v1361_v30 = vld [vmem:[%s1751_s1 + $0xe0] ss:$16 sps:$4 sm:$0xff]   ;;  %v1364_v33 = vld [vmem:[%s1751_s1 + $0x8c] ss:$16 sps:$4 sm:$0xff]   ;;  %v249_v19 = vsub.s32 2, %v240_v45 }
  0x12   : > { %1262 = vmatpush3.bf16.msra.mxu1 %v1362_v31  ;;  %v1365_v34 = vld [vmem:[%s1751_s1 + $0xac] ss:$16 sps:$4 sm:$0xff]   ;;  %v1368_v37 = vld [vmem:[%s1752_s2] ss:$8 sps:$4 sm:$0xff]   ;;  %v1371_v40 = vld [vmem:[%s1752_s2 + $0x30] ss:$8 sps:$4 sm:$0xff]  }
  0x13   : > { %389 = vmatpush1.bf16.msra.mxu0 %v1339_v9  ;;  %1263 = vmatprep.subr.bf16.mxu1 %v1429_v4  ;;  %v1366_v35 = vld [vmem:[%s1751_s1 + $0xcc] ss:$16 sps:$4 sm:$0xff]   ;;  %v1370_v39 = vld [vmem:[%s1752_s2 + $0x20] ss:$8 sps:$4 sm:$0xff]   ;;  %v1373_v42 = vld [vmem:[%s1752_s2 + $0x50] ss:$8 sps:$4 sm:$0xff]  }
  0x14   : > { %390 = vmatprep.subr.bf16.mxu0 %v1340_v10  ;;  %v1367_v36 = vld [vmem:[%s1751_s1 + $0xec] ss:$16 sps:$4 sm:$0xff]   ;;  %v1372_v41 = vld [vmem:[%s1752_s2 + $0x40] ss:$8 sps:$4 sm:$0xff]  }
  0x15   : > { %v1374_v43 = vld [vmem:[%s1752_s2 + $0x60] ss:$8 sps:$4 sm:$0xff]  }
  0x16   : > { %1264 = vmatpush3.bf16.msra.mxu1 %v1363_v32  ;;  %v237_v47 = vld [vmem:[%s1753_s3] sm:$0x7] }
  0x17   : > { %391 = vmatpush1.bf16.msra.mxu0 %v1342_v11  ;;  %1265 = vmatprep.subr.bf16.mxu1 %v1429_v4  ;;  %v242_v49 = vrot.slane %v237_v47, %v241_v46  ;;  %v246_v50 = vrot.slane %v237_v47, %v245_v48  ;;  %v1389_v48 = vld [vmem:[%s1752_s2 + $0x4] ss:$8 sps:$4 sm:$0xff]  }
  0x18   : > { %392 = vmatprep.subr.bf16.mxu0 %v1343_v12 }
  0x1a   : > { %1266 = vmatpush3.bf16.msra.mxu1 %v1364_v33 }
  0x1b   : > { %393 = vmatpush1.bf16.msra.mxu0 %v1345_v13  ;;  %1267 = vmatprep.subr.bf16.mxu1 %v1429_v4 }
  0x1c   : > { %394 = vmatprep.subr.bf16.mxu0 %v1346_v14 }
  0x1e   : > { %1268 = vmatpush3.bf16.msra.mxu1 %v1365_v34 }
  0x1f   : > { %395 = vmatpush1.bf16.msra.mxu0 %v1348_v16  ;;  %1269 = vmatprep.subr.bf16.mxu1 %v1429_v4 }
  0x20   : > { %396 = vmatprep.subr.bf16.mxu0 %v1349_v17 }
  0x22   : > { %1270 = vmatpush3.bf16.msra.mxu1 %v1366_v35 }
  0x23   : > { %397 = vmatpush1.bf16.msra.mxu0 %v1351_v18  ;;  %1271 = vmatprep.subr.bf16.mxu1 %v1429_v4  ;;  %v1375_v18 = vld [vmem:[%s1752_s2 + $0x70] ss:$8 sps:$4 sm:$0xff]  }
  0x24   : > { %1277 = vmatprep.subr.bf16.mxu0 %v1429_v4 }
  0x26   : > { %415 = vmatmul.mubr.bf16.vlgmr.msra.gmra.mrb[0].mxu0 %v204_v22  ;;  %1272 = vmatpush3.bf16.msra.mxu1 %v1367_v36 }
  0x27   : > { %1278 = vmatpush3.bf16.msra.mxu0 %v1352_v21  ;;  %1293 = vmatprep.mubr.msk.bf16.mxu0 %vm1430_vm0, %v1429_v4  ;;  %v250_v21 = vrot.slane %v237_v47, %v249_v19  ;;  %v1388_v47 = vld [vmem:[%s1752_s2 + $0x84] ss:$8 sps:$4 sm:$0xff]  }
  0x28   : > { %1279 = vmatprep.subr.bf16.mxu0 %v1429_v4  ;;  %1297 = vmatprep.subr.bf16.mxu1 %v1429_v4  ;;  %v1400_v19 = vld [vmem:[%s1752_s2 + $0xe4] ss:$8 sps:$4 sm:$0xff]  }
  0x29   : > { %1274 = vmatmul.mubr.bf16.vlgmr.msra.gmra.mrb[0].mxu1 %v204_v22 }
  0x2a   : > { %1298 = vmatpush3.bf16.msra.mxu1 %v1368_v37  ;;  %1313 = vmatprep.mubr.msk.bf16.mxu1 %vm1430_vm0, %v1429_v4 }
  0x2b   : > { %1280 = vmatpush3.bf16.msra.mxu0 %v1353_v23  ;;  %1299 = vmatprep.subr.bf16.mxu1 %v1429_v4 }
  0x2c   : > { %1281 = vmatprep.subr.bf16.mxu0 %v1429_v4 }
  0x2e   : > { %1300 = vmatpush3.bf16.msra.mxu1 %v1369_v38 }
  0x2f   : > { %1282 = vmatpush3.bf16.msra.mxu0 %v1354_v24  ;;  %1301 = vmatprep.subr.bf16.mxu1 %v1429_v4 }
  0x30   : > { %1283 = vmatprep.subr.bf16.mxu0 %v1429_v4 }
  0x32   : > { %1302 = vmatpush3.bf16.msra.mxu1 %v1370_v39 }
  0x33   : > { %1284 = vmatpush3.bf16.msra.mxu0 %v1355_v25  ;;  %1303 = vmatprep.subr.bf16.mxu1 %v1429_v4 }
  0x34   : > { %1285 = vmatprep.subr.bf16.mxu0 %v1429_v4 }
  0x36   : > { %1304 = vmatpush3.bf16.msra.mxu1 %v1371_v40 }
  0x37   : > { %1286 = vmatpush3.bf16.msra.mxu0 %v1356_v26  ;;  %1305 = vmatprep.subr.bf16.mxu1 %v1429_v4 }
  0x38   : > { %1287 = vmatprep.subr.bf16.mxu0 %v1429_v4 }
  0x3a   : > { %1306 = vmatpush3.bf16.msra.mxu1 %v1372_v41 }
  0x3b   : > { %1288 = vmatpush3.bf16.msra.mxu0 %v1357_v27  ;;  %1307 = vmatprep.subr.bf16.mxu1 %v1429_v4 }
  0x3c   : > { %1289 = vmatprep.subr.bf16.mxu0 %v1429_v4 }
  0x3e   : > { %1308 = vmatpush3.bf16.msra.mxu1 %v1373_v42 }
  0x3f   : > { %1290 = vmatpush3.bf16.msra.mxu0 %v1359_v28  ;;  %1309 = vmatprep.subr.bf16.mxu1 %v1429_v4 }
  0x40   : > { %1291 = vmatprep.subr.bf16.mxu0 %v1429_v4 }
  0x42   : > { %1310 = vmatpush3.bf16.msra.mxu1 %v1374_v43 }
  0x43   : > { %1292 = vmatpush3.bf16.msra.mxu0 %v1361_v30  ;;  %1311 = vmatprep.subr.bf16.mxu1 %v1429_v4 }
  0x44   : > { %1235 = vmatprep.subr.bf16.mxu0 %v1388_v47 }
  0x46   : > { %1312 = vmatpush3.bf16.msra.mxu1 %v1375_v18  ;;  %v1387_v18 = vld [vmem:[%s1752_s2 + $0x1b4] ss:$8 sps:$4 sm:$0xff]  }
  0x47   : > { %1011 = vmatprep.subr.bf16.mxu1 %v1428_v2 }
  0xf9   : > { %v416_v51 = vpop.f32.mrb[0].mxu0 }
  0xfa   : > { %v417_v52 = vadd.f32 %v416_v51, %v242_v49  ;;  %v418_v53 = vpop.f32.mrb[1].mxu0  ;;  %v1392_v51 = vld [vmem:[%s1752_s2 + $0xa4] ss:$8 sps:$4 sm:$0xff]  }
  0xfb   : > { %v419_v54 = vadd.f32 %v418_v53, %v246_v50  ;;  %v420_v55 = vpop.f32.mrb[2].mxu0  ;;  %v1394_v53 = vld [vmem:[%s1752_s2 + $0xb4] ss:$8 sps:$4 sm:$0xff]  }
  0xfc   : > { %v421_v56 = vadd.f32 %v420_v55, %v242_v49  ;;  %v422_v57 = vpop.f32.mrb[3].mxu0  ;;  %v466_v60 = vmax.f32 %v417_v52, 0.0  ;;  %v459_v20 = vpop.f32.mrb[0].mxu1  ;;  %v1390_v49 = vld [vmem:[%s1752_s2 + $0x94] ss:$8 sps:$4 sm:$0xff]  }
  0xfd   : > { %v470_v58 = vmul.f32 0.044715, %v419_v54  ;;  %v423_v59 = vadd.f32 %v422_v57, %v246_v50  ;;  %v468_v12 = vmul.f32 0.5, %v419_v54  ;;  %v1275_v22 = vpop.f32.mrb[1].mxu1  ;;  %v460_v24 = vadd.f32 %v459_v20, %v250_v21  ;;  %v1391_v50 = vld [vmem:[%s1752_s2 + $0x14] ss:$8 sps:$4 sm:$0xff]  }
  0xfe   : > { %v467_v61 = vmax.f32 %v421_v56, 0.0  ;;  %v462_v23 = vpop.f32.mrb[2].mxu1  ;;  %v1393_v52 = vld [vmem:[%s1752_s2 + $0x24] ss:$8 sps:$4 sm:$0xff]   ;;  %v1398_v57 = vld [vmem:[%s1752_s2 + $0xd4] ss:$8 sps:$4 sm:$0xff]  }
  0xff   : > { %v472_v62 = vmul.f32 %v470_v58, %v419_v54  ;;  %v471_v63 = vmul.f32 0.044715, %v423_v59  ;;  %v469_v13 = vmul.f32 0.5, %v423_v59  ;;  %v463_v25 = vadd.f32 %v462_v23, %v250_v21  ;;  %v1276_v26 = vpop.f32.mrb[3].mxu1  ;;  %v1396_v55 = vld [vmem:[%s1752_s2 + $0xc4] ss:$8 sps:$4 sm:$0xff]  }
 0x100   : > { %v504_v0 = vpack.c.bf16 %v467_v61, %v466_v60  ;;  %v488_v27 = vmul.f32 0.044715, %v460_v24  ;;  %v486_v39 = vmul.f32 0.5, %v460_v24  ;;  %v1397_v56 = vld [vmem:[%s1752_s2 + $0x44] ss:$8 sps:$4 sm:$0xff]  }
 0x101   : > { %v474_v1 = vmul.f32 %v472_v62, %v419_v54  ;;  %v473_v3 = vmul.f32 %v471_v63, %v423_v59  ;;  %v489_v28 = vmul.f32 0.044715, %v463_v25  ;;  %v487_v40 = vmul.f32 0.5, %v463_v25  ;;  %v1399_v58 = vld [vmem:[%s1752_s2 + $0x54] ss:$8 sps:$4 sm:$0xff]  }
 0x102   : > { %1294 = vmatmul.mubr.bf16.vlgmr.msra.gmra.mrb[4].mxu0 %v504_v0  ;;  %v490_v29 = vmul.f32 %v488_v27, %v460_v24  ;;  %v1401_v20 = vld [vmem:[%s1752_s2 + $0x64] ss:$8 sps:$4 sm:$0xff]   ;;  %v1402_v21 = vld [vmem:[%s1752_s2 + $0xf4] ss:$8 sps:$4 sm:$0xff]  }
 0x103   : > { %v476_v4 = vadd.f32 %v474_v1, %v419_v54  ;;  %v475_v5 = vmul.f32 %v473_v3, %v423_v59  ;;  %v491_v30 = vmul.f32 %v489_v28, %v463_v25  ;;  %1236 = vmatpush3.bf16.msra.mxu0 %v1389_v48  ;;  %v1395_v54 = vld [vmem:[%s1752_s2 + $0x34] ss:$8 sps:$4 sm:$0xff]   ;;  %v1376_v3 = vld [vmem:[%s1752_s2 + $0x104] ss:$8 sps:$4 sm:$0xff]  }
 0x104   : > { %v492_v31 = vmul.f32 %v490_v29, %v460_v24  ;;  %1237 = vmatprep.subr.bf16.mxu0 %v1390_v49 }
 0x105   : > { %v478_v6 = vmul.f32 0.7978846, %v476_v4  ;;  %v477_v7 = vadd.f32 %v475_v5, %v423_v59  ;;  %v493_v32 = vmul.f32 %v491_v30, %v463_v25  ;;  %v1158_v59 = vld [vmem:[%s1753_s3 + $0x3] ss:$0 sm:$0xff]  ;;  %v1377_v5 = vld [vmem:[%s1752_s2 + $0x114] ss:$8 sps:$4 sm:$0xff]  }
 0x106   : > { %v494_v33 = vadd.f32 %v492_v31, %v460_v24 }
 0x107   : > { %1404 = vtanh.f32 %v478_v6  ;;  %v479_v8 = vmul.f32 0.7978846, %v477_v7  ;;  %v495_v34 = vadd.f32 %v493_v32, %v463_v25  ;;  %1238 = vmatpush3.bf16.msra.mxu0 %v1391_v50  ;;  %v1378_v6 = vld [vmem:[%s1752_s2 + $0x124] ss:$8 sps:$4 sm:$0xff]   ;;  %v1379_v7 = vld [vmem:[%s1752_s2 + $0x134] ss:$8 sps:$4 sm:$0xff]  }
 0x108   : > { %v496_v35 = vmul.f32 0.7978846, %v494_v33  ;;  %1239 = vmatprep.subr.bf16.mxu0 %v1392_v51 }
 0x109   : > { %1406 = vtanh.f32 %v479_v8  ;;  %v497_v36 = vmul.f32 0.7978846, %v495_v34  ;;  %v1380_v8 = vld [vmem:[%s1752_s2 + $0x144] ss:$8 sps:$4 sm:$0xff]  }
 0x10a   : > { %1408 = vtanh.f32 %v496_v35  ;;  %v1176_v34 = vld [vmem:[%s1753_s3 + $0x5] ss:$0 sm:$0xff] }
 0x10b   : > { %1410 = vtanh.f32 %v497_v36  ;;  %1240 = vmatpush3.bf16.msra.mxu0 %v1393_v52 }
 0x10c   : > { %1241 = vmatprep.subr.bf16.mxu0 %v1394_v53  ;;  %v1053_v53 = vand.u32 127, %v239_v44 }
 0x10e   : > { %vm1064_vm2 = vcmp.lt.s32.totalorder %v1053_v53, 5 }
 0x10f   : > { %1242 = vmatpush3.bf16.msra.mxu0 %v1395_v54 }
 0x110   : > { %1243 = vmatprep.subr.bf16.mxu0 %v1396_v55 }
 0x111   : > { %v1405_v9 = vpop.eup %1404 }
 0x112   : > { %v482_v10 = vadd.f32 1.0, %v1405_v9  ;;  %v1381_v9 = vld [vmem:[%s1752_s2 + $0x154] ss:$8 sps:$4 sm:$0xff]  }
 0x113   : > { %v1407_v11 = vpop.eup %1406  ;;  %1244 = vmatpush3.bf16.msra.mxu0 %v1397_v56 }
 0x114   : > { %v483_v14 = vadd.f32 1.0, %v1407_v11  ;;  %v1624_v15 = vmul.f32 %v482_v10, %v468_v12  ;;  %v1409_v37 = vpop.eup %1408  ;;  %1245 = vmatprep.subr.bf16.mxu0 %v1398_v57  ;;  %v1382_v10 = vld [vmem:[%s1752_s2 + $0x164] ss:$8 sps:$4 sm:$0xff]   ;;  %v1383_v11 = vld [vmem:[%s1752_s2 + $0x174] ss:$8 sps:$4 sm:$0xff]  }
 0x115   : > { %v1411_v38 = vpop.eup %1410  ;;  %v500_v41 = vadd.f32 1.0, %v1409_v37  ;;  %v1384_v12 = vld [vmem:[%s1752_s2 + $0x184] ss:$8 sps:$4 sm:$0xff]  }
 0x116   : > { %v1626_v16 = vmul.f32 %v483_v14, %v469_v13  ;;  %v501_v42 = vadd.f32 1.0, %v1411_v38  ;;  %v1385_v13 = vld [vmem:[%s1752_s2 + $0x194] ss:$8 sps:$4 sm:$0xff]   ;;  %v1386_v14 = vld [vmem:[%s1752_s2 + $0x1a4] ss:$8 sps:$4 sm:$0xff]  }
 0x117   : > { %v502_v43 = vmul.f32 %v500_v41, %v486_v39  ;;  %1246 = vmatpush3.bf16.msra.mxu0 %v1399_v58 }
 0x118   : > { %v733_v17 = vpack.c.bf16 %v1626_v16, %v1624_v15  ;;  %v503_v45 = vmul.f32 %v501_v42, %v487_v40  ;;  %1247 = vmatprep.subr.bf16.mxu0 %v1400_v19  ;;  %v1167_v15 = vld [vmem:[%s1753_s3 + $0x4] ss:$0 sm:$0xff] }
 0x11a   : > { %v734_v46 = vpack.c.bf16 %v503_v45, %v502_v43 }
 0x11b   : > { %1248 = vmatpush3.bf16.msra.mxu0 %v1401_v20 }
 0x11c   : > { %1249 = vmatprep.subr.bf16.mxu0 %v1402_v21 }
 0x1d5   : > { %v610_v60 = vpop.f32.mrb[4].mxu0 }
 0x1d6   : > { %v1295_v61 = vpop.f32.mrb[5].mxu0  ;;  %v611_v63 = vadd.f32 %v1158_v59, %v610_v60 }
 0x1d7   : > { %v613_v62 = vpop.f32.mrb[6].mxu0 }
 0x1d8   : > { %v614_v0 = vadd.f32 %v1158_v59, %v613_v62  ;;  %v1296_v1 = vpop.f32.mrb[7].mxu0 }
 0x1da   : > { %v617_v4 = vpack.c.bf16 %v614_v0, %v611_v63 }
 0x1dc   : > { %1314 = vmatmul.mubr.bf16.vlgmr.msra.gmra.mrb[4].mxu1 %v617_v4 }
 0x1dd   : > { %1012 = vmatpush1.bf16.msra.mxu1 %v1376_v3  ;;  %1205 = vmatprep.mubr.msk.bf16.mxu1 %vm966_vm1, %v734_v46 }
 0x1de   : > { %1013 = vmatprep.subr.bf16.mxu1 %v1428_v2 }
 0x1e1   : > { %1014 = vmatpush1.bf16.msra.mxu1 %v1377_v5 }
 0x1e2   : > { %1015 = vmatprep.subr.bf16.mxu1 %v1428_v2 }
 0x1e5   : > { %1016 = vmatpush1.bf16.msra.mxu1 %v1378_v6 }
 0x1e6   : > { %1017 = vmatprep.subr.bf16.mxu1 %v1428_v2 }
 0x1e9   : > { %1018 = vmatpush1.bf16.msra.mxu1 %v1379_v7 }
 0x1ea   : > { %1019 = vmatprep.subr.bf16.mxu1 %v1428_v2 }
 0x1ed   : > { %1020 = vmatpush1.bf16.msra.mxu1 %v1380_v8 }
 0x1ee   : > { %1021 = vmatprep.subr.bf16.mxu1 %v1428_v2 }
 0x1f1   : > { %1022 = vmatpush1.bf16.msra.mxu1 %v1381_v9 }
 0x1f2   : > { %1023 = vmatprep.subr.bf16.mxu1 %v1428_v2 }
 0x1f5   : > { %1024 = vmatpush1.bf16.msra.mxu1 %v1382_v10 }
 0x1f6   : > { %1025 = vmatprep.subr.bf16.mxu1 %v1428_v2 }
 0x1f9   : > { %1026 = vmatpush1.bf16.msra.mxu1 %v1383_v11 }
 0x1fa   : > { %1027 = vmatprep.subr.bf16.mxu1 %v1428_v2 }
 0x1fd   : > { %1028 = vmatpush1.bf16.msra.mxu1 %v1384_v12 }
 0x1fe   : > { %1029 = vmatprep.subr.bf16.mxu1 %v1428_v2 }
 0x201   : > { %1030 = vmatpush1.bf16.msra.mxu1 %v1385_v13 }
 0x202   : > { %1031 = vmatprep.subr.bf16.mxu1 %v1428_v2 }
 0x205   : > { %1032 = vmatpush1.bf16.msra.mxu1 %v1386_v14 }
 0x206   : > { %1033 = vmatprep.subr.bf16.mxu1 %v1428_v2  ;;  %v1403_v2 = vld [vmem:[%s1752_s2 + $0x74] ss:$8 sps:$4 sm:$0xff]  }
 0x207   : > { %1250 = vmatpush3.bf16.msra.mxu0 %v1403_v2 }
 0x209   : > { %1034 = vmatpush1.bf16.msra.mxu1 %v1387_v18 }
 0x20c   : > { %1044 = vmatmul.mubr.bf16.vlgmr.msra.gmra.mrb[8].mxu1 %v733_v17 }
 0x2af   : > { %v723_v16 = vpop.f32.mrb[4].mxu1 }
 0x2b0   : > { %v724_v17 = vadd.f32 %v1167_v15, %v723_v16  ;;  %v1315_v22 = vpop.f32.mrb[5].mxu1 }
 0x2b1   : > { %v726_v23 = vpop.f32.mrb[6].mxu1 }
 0x2b2   : > { %v727_v24 = vadd.f32 %v1167_v15, %v726_v23  ;;  %v1316_v25 = vpop.f32.mrb[7].mxu1  ;;  %v730_v26 = vmax.f32 %v724_v17, 0.0 }
 0x2b4   : > { %v731_v27 = vmax.f32 %v727_v24, 0.0 }
 0x2b6   : > { %v732_v28 = vpack.c.bf16 %v731_v27, %v730_v26 }
 0x2b8   : > { %1002 = vmatprep.mubr.bf16.mxu0 %v732_v28 }
 0x2b9   : > { %1003 = vmatmul.mubr.bf16.vlgmr.msra.gmra.mrb[8].mxu0 %v617_v4 }
 0x2df   : > { %v1045_v29 = vpop.f32.mrb[8].mxu1 }
 0x2e0   : > { %v1047_v30 = vpop.f32.mrb[9].mxu1 }
 0x2e1   : > { %v1048_v31 = vpop.f32.mrb[10].mxu1 }
 0x2e2   : > { %v1050_v32 = vpop.f32.mrb[11].mxu1 }
 0x38c   : > { %v1251_v33 = vpop.f32.mrb[8].mxu0 }
 0x38d   : > { %v1252_v35 = vpop.f32.mrb[9].mxu0 }
 0x38e   : > { %v1253_v36 = vadd.f32 %v1252_v35, %v1251_v33  ;;  %v1254_v37 = vpop.f32.mrb[10].mxu0 }
 0x38f   : > { %v1255_v38 = vpop.f32.mrb[11].mxu0 }
 0x390   : > { %v1005_v39 = vadd.f32 %v1253_v36, %v1176_v34  ;;  %v1256_v40 = vadd.f32 %v1255_v38, %v1254_v37 }
 0x392   : > { %v1046_v41 = vadd.f32 %v1045_v29, %v1005_v39  ;;  %v1008_v42 = vadd.f32 %v1256_v40, %v1176_v34 }
 0x394   : > { %v1054_v43 = vsub.f32 0.0, %v1046_v41  ;;  %v1049_v45 = vadd.f32 %v1048_v31, %v1008_v42 }
 0x396   : > { %v1056_v46 = vmul.f32 1.442695, %v1054_v43  ;;  %v1055_v47 = vsub.f32 0.0, %v1049_v45 }
 0x398   : > { %1412 = vpow2.f32 %v1056_v46  ;;  %v1058_v48 = vmul.f32 1.442695, %v1055_v47 }
 0x39a   : > { %1414 = vpow2.f32 %v1058_v48 }
 0x3a2   : > { %v1413_v49 = vpop.eup %1412 }
 0x3a3   : > { %v1060_v50 = vadd.f32 1.0, %v1413_v49 }
 0x3a4   : > { %v1415_v51 = vpop.eup %1414 }
 0x3a5   : > { %1416 = vrcp.f32 %v1060_v50  ;;  %v1061_v52 = vadd.f32 1.0, %v1415_v51 }
 0x3a7   : > { %1418 = vrcp.f32 %v1061_v52 }
 0x3af   : > { %v1417_v54 = vpop.eup %1416 }
 0x3b0   : > { %v1065_v55 = vsel %vm1064_vm2, %v1417_v54, %v1046_v41 }
 0x3b1   : > { %v1419_v56 = vpop.eup %1418  ;;  %1067 = vst [vmem:[%s199_s29] sm:$0xff] %v1065_v55 }
 0x3b2   : > { %v1066_v57 = vsel %vm1064_vm2, %v1419_v56, %v1049_v45 }
 0x3b3   : > { %1068 = vst [vmem:[%s199_s29 + $0x8] sm:$0xff] %v1066_v57 }
 0x3b4 PF: > { %s14_s15 = sadd.s32 1, %s1426_s15  }
 0x3b5   : > { %p11_p4 = scmp.ge.s32.totalorder %s14_s15, 4  }
 0x3b7   :  { %13 = sbr.rel (!%p11_p4) target bundleno = 1 (0x1), region = 66 }

</bundles_post_ra>
